<compile_context>
chip_gen: v7x
topology: tpu7x:2x2x1
jax: 0.10.0
libtpu: 0.0.40
codegen_flags: <defaults>
</compile_context>

<pallas_src>
import math
import functools

import jax
import jax.numpy as jnp
from jax import lax
from jax.experimental import pallas as pl
from jax.experimental.pallas import tpu as pltpu


# ----------------------------------------------------------------------------
# Fused kernel: per-batch QKV + causal attention + output projection
# ----------------------------------------------------------------------------
def _attn_kernel(x_ref, wqkv_ref, bqkv_ref, wo_ref, bo_ref, o_ref,
                 xh_ref, acc_ref, *, num_heads, head_size):
    T = x_ref.shape[1]
    hs = head_size

    # --- prologue: de-interleave heads into (H, T, hs) bf16 scratch ---------
    # Static lane slices only; the head loop below then needs only dynamic
    # leading-dim indexing (robust to lower, no dynamic lane offsets).
    for h in range(num_heads):
        xh_ref[h] = x_ref[0, :, h * hs:(h + 1) * hs].astype(jnp.bfloat16)

    # --- loop invariants (hoisted; JAX does not CSE broadcasts) -------------
    wqkv = wqkv_ref[...]                                       # (hs, 3hs) bf16
    bqkv_b = jnp.broadcast_to(bqkv_ref[...], (T, 3 * hs))      # (T, 3hs) f32
    row = lax.broadcasted_iota(jnp.int32, (T, T), 0)
    col = lax.broadcasted_iota(jnp.int32, (T, T), 1)
    causal = col <= row
    neg_inf = jnp.float32(-1e20)

    acc_ref[...] = jnp.zeros_like(acc_ref)                     # (T, E) f32

    def head_body(h, carry):
        xh = xh_ref[h]                                         # (T, hs) bf16

        # fused QKV projection (weights shared across heads); f32 accumulate,
        # bias added in f32, operands re-cast to bf16 for the MXU.
        qkv = jnp.dot(xh, wqkv, preferred_element_type=jnp.float32) + bqkv_b
        q = qkv[:, 0 * hs:1 * hs].astype(jnp.bfloat16)         # pre-scaled 1/sqrt(hs)
        k = qkv[:, 1 * hs:2 * hs].astype(jnp.bfloat16)
        v = qkv[:, 2 * hs:3 * hs].astype(jnp.bfloat16)

        # scores = q @ k^T (contract last dims; no transpose materialized)
        s = lax.dot_general(q, k, (((1,), (1,)), ((), ())),
                            preferred_element_type=jnp.float32)     # (T, T) f32
        s = jnp.where(causal, s, neg_inf)

        # softmax in f32; normalization deferred until after the PV matmul
        m = jnp.max(s, axis=-1, keepdims=True)
        e = jnp.exp(s - m)
        denom = jnp.sum(e, axis=-1, keepdims=True)

        pv = jnp.dot(e.astype(jnp.bfloat16), v,
                     preferred_element_type=jnp.float32)            # (T, hs)
        out_h = pv * pl.reciprocal(denom, approx=True)              # (T, hs) f32

        # fused output projection, accumulated per head:
        #   out += out_h @ Wo^T[h*hs:(h+1)*hs, :]
        wo_h = wo_ref[h]                                            # (hs, E) bf16
        acc_ref[...] += jnp.dot(out_h.astype(jnp.bfloat16), wo_h,
                                preferred_element_type=jnp.float32)
        return carry

    lax.fori_loop(0, num_heads, head_body, 0)

    # single lane-dense (T, E) store; projection bias added once in f32
    o_ref[0] = (acc_ref[...] + bo_ref[...]).astype(o_ref.dtype)


def attention_fused(x, w_qkv, b_qkv, wo_r, bo, *, num_heads, head_size):
    """x: (B,T,E) -> (B,T,E); w_qkv: (hs,3hs) bf16; wo_r: (H,hs,E) bf16."""
    B, T, E = x.shape
    hs = head_size
    kernel = functools.partial(_attn_kernel,
                               num_heads=num_heads, head_size=hs)
    return pl.pallas_call(
        kernel,
        out_shape=jax.ShapeDtypeStruct((B, T, E), jnp.float32),
        grid_spec=pltpu.PrefetchScalarGridSpec(
            num_scalar_prefetch=0,
            grid=(B,),
            in_specs=[
                pl.BlockSpec((1, T, E), lambda b: (b, 0, 0)),
                pl.BlockSpec((hs, 3 * hs), lambda b: (0, 0)),          # resident
                pl.BlockSpec((1, 3 * hs), lambda b: (0, 0)),           # resident
                pl.BlockSpec((num_heads, hs, E), lambda b: (0, 0, 0)),  # resident
                pl.BlockSpec((1, E), lambda b: (0, 0)),                # resident
            ],
            out_specs=pl.BlockSpec((1, T, E), lambda b: (b, 0, 0)),
            scratch_shapes=[
                pltpu.VMEM((num_heads, T, hs), jnp.bfloat16),   # per-head input
                pltpu.VMEM((T, E), jnp.float32),                # projection acc
            ],
        ),
        compiler_params=pltpu.CompilerParams(
            dimension_semantics=("parallel",),
            vmem_limit_bytes=64 * 1024 * 1024,
        ),
    )(x, w_qkv, b_qkv, wo_r, bo)


# ----------------------------------------------------------------------------
# Full module forward
# ----------------------------------------------------------------------------
def gpt2_attention_classic(x, params, *, num_heads):
    B, T, E = x.shape
    hs = E // num_heads
    scale = 1.0 / math.sqrt(hs)

    # Fuse Q/K/V weights (pre-transposed to (in,out)); fold 1/sqrt(hs) into Q;
    # cast MXU weights to bf16 (biases stay f32, added after f32 accumulation).
    w_qkv = jnp.concatenate(
        [params["wq"].T * scale, params["wk"].T, params["wv"].T],
        axis=1).astype(jnp.bfloat16)                              # (hs, 3hs)
    b_qkv = jnp.concatenate(
        [params["bq"] * scale, params["bk"], params["bv"]]
    ).reshape(1, 3 * hs).astype(jnp.float32)                      # (1, 3hs)

    # Output projection weight as (H, hs, E) so per-head row blocks are a
    # leading-dim index inside the kernel (pure reshape, no data movement).
    wo_r = params["wo"].T.reshape(num_heads, hs, E).astype(jnp.bfloat16)
    bo = params["bo"].reshape(1, E).astype(jnp.float32)

    return attention_fused(x, w_qkv, b_qkv, wo_r, bo,
                           num_heads=num_heads, head_size=hs)


# ----------------------------------------------------------------------------
# Pure-JAX reference for sanity check
# ----------------------------------------------------------------------------
def reference(x, params, *, num_heads):
    B, T, E = x.shape
    hs = E // num_heads
    xh = x.reshape(B, T, num_heads, hs)
    q = xh @ params["wq"].T + params["bq"]
    k = xh @ params["wk"].T + params["bk"]
    v = xh @ params["wv"].T + params["bv"]
    q, k, v = (a.transpose(0, 2, 1, 3) for a in (q, k, v))     # (B,H,T,hs)
    s = (q @ k.transpose(0, 1, 3, 2)) / math.sqrt(hs)
    mask = jnp.tril(jnp.ones((T, T)))
    s = jnp.where(mask == 0, -1e20, s)
    p = jax.nn.softmax(s, axis=-1)
    o = (p @ v).transpose(0, 2, 1, 3).reshape(B, T, E)
    return o @ params["wo"].T + params["bo"]


if __name__ == "__main__":
    # config: emb_dim=32, attn_num_heads=4 -> head_size=8
    B, T, E, H = 2, 8, 32, 4
    hs = E // H

    key = jax.random.PRNGKey(0)
    ks = jax.random.split(key, 9)
    scale_h = 1.0 / math.sqrt(hs)
    scale_e = 1.0 / math.sqrt(E)
    params = {
        "wq": jax.random.uniform(ks[0], (hs, hs), jnp.float32, -scale_h, scale_h),
        "bq": jax.random.uniform(ks[1], (hs,),   jnp.float32, -scale_h, scale_h),
        "wk": jax.random.uniform(ks[2], (hs, hs), jnp.float32, -scale_h, scale_h),
        "bk": jax.random.uniform(ks[3], (hs,),   jnp.float32, -scale_h, scale_h),
        "wv": jax.random.uniform(ks[4], (hs, hs), jnp.float32, -scale_h, scale_h),
        "bv": jax.random.uniform(ks[5], (hs,),   jnp.float32, -scale_h, scale_h),
        "wo": jax.random.uniform(ks[6], (E, E),   jnp.float32, -scale_e, scale_e),
        "bo": jax.random.uniform(ks[7], (E,),     jnp.float32, -scale_e, scale_e),
    }
    x = jax.random.normal(ks[8], (B, T, E), jnp.float32)

    out = gpt2_attention_classic(x, params, num_heads=H)
    out = jax.block_until_ready(out)

    ref = reference(x, params, num_heads=H)
    assert out.shape == (B, T, E)
    # bf16 MXU operands + approx reciprocal in the softmax -> loosened tolerance
    assert jnp.allclose(out, ref, atol=5e-2, rtol=5e-2), "mismatch vs reference"

    print("KERNEL_OK")
</pallas_src>

<mosaic_0001>
module attributes {stable_mosaic.version = 11 : i64} {
  func.func @_attn_kernel(%arg0: i32, %arg1: memref<1x8x32xf32, #tpu.memory_space<vmem>>, %arg2: memref<8x24xbf16, #tpu.memory_space<vmem>>, %arg3: memref<1x24xf32, #tpu.memory_space<vmem>>, %arg4: memref<4x8x32xbf16, #tpu.memory_space<vmem>>, %arg5: memref<1x32xf32, #tpu.memory_space<vmem>>, %arg6: memref<1x8x32xf32, #tpu.memory_space<vmem>>, %arg7: memref<4x8x8xbf16, #tpu.memory_space<vmem>>, %arg8: memref<8x32xf32, #tpu.memory_space<vmem>>) attributes {dimension_semantics = [#tpu.dimension_semantics<parallel>], iteration_bounds = array<i64: 2>, scalar_prefetch = 0 : i64, scratch_operands = 2 : i64, tpu.core_type = #tpu.core_type<tc>, window_params = [{transform_indices = @transform_0, window_bounds = array<i64: 1, 8, 32>}, {pipeline_mode = #tpu.pipeline_mode<synchronous>, transform_indices = @transform_1, window_bounds = array<i64: 8, 24>}, {pipeline_mode = #tpu.pipeline_mode<synchronous>, transform_indices = @transform_2, window_bounds = array<i64: 1, 24>}, {pipeline_mode = #tpu.pipeline_mode<synchronous>, transform_indices = @transform_3, window_bounds = array<i64: 4, 8, 32>}, {pipeline_mode = #tpu.pipeline_mode<synchronous>, transform_indices = @transform_4, window_bounds = array<i64: 1, 32>}, {transform_indices = @transform_5, window_bounds = array<i64: 1, 8, 32>}]} {
    %c0 = arith.constant 0 : index
    %c0_0 = arith.constant 0 : index
    %c0_1 = arith.constant 0 : index
    %0 = vector.load %arg1[%c0, %c0_0, %c0_1] : memref<1x8x32xf32, #tpu.memory_space<vmem>>, vector<1x8x8xf32>
    %1 = vector.shape_cast %0 : vector<1x8x8xf32> to vector<8x8xf32>
    %2 = arith.truncf %1 : vector<8x8xf32> to vector<8x8xbf16>
    %c0_2 = arith.constant 0 : index
    %c0_3 = arith.constant 0 : index
    %c0_4 = arith.constant 0 : index
    %3 = vector.load %arg7[%c0_2, %c0_3, %c0_4] : memref<4x8x8xbf16, #tpu.memory_space<vmem>>, vector<1x8x8xbf16>
    %4 = vector.shape_cast %3 : vector<1x8x8xbf16> to vector<8x8xbf16>
    %5 = vector.shape_cast %2 : vector<8x8xbf16> to vector<1x8x8xbf16>
    tpu.vector_store %arg7[%c0_2, %c0_3, %c0_4], %5 {strides = array<i32>} : memref<4x8x8xbf16, #tpu.memory_space<vmem>>, vector<1x8x8xbf16>,
    %c0_5 = arith.constant 0 : index
    %c0_6 = arith.constant 0 : index
    %c8 = arith.constant 8 : index
    %6 = vector.load %arg1[%c0_5, %c0_6, %c8] : memref<1x8x32xf32, #tpu.memory_space<vmem>>, vector<1x8x8xf32>
    %7 = vector.shape_cast %6 : vector<1x8x8xf32> to vector<8x8xf32>
    %8 = arith.truncf %7 : vector<8x8xf32> to vector<8x8xbf16>
    %c1 = arith.constant 1 : index
    %c0_7 = arith.constant 0 : index
    %c0_8 = arith.constant 0 : index
    %9 = vector.load %arg7[%c1, %c0_7, %c0_8] : memref<4x8x8xbf16, #tpu.memory_space<vmem>>, vector<1x8x8xbf16>
    %10 = vector.shape_cast %9 : vector<1x8x8xbf16> to vector<8x8xbf16>
    %11 = vector.shape_cast %8 : vector<8x8xbf16> to vector<1x8x8xbf16>
    tpu.vector_store %arg7[%c1, %c0_7, %c0_8], %11 {strides = array<i32>} : memref<4x8x8xbf16, #tpu.memory_space<vmem>>, vector<1x8x8xbf16>,
    %c0_9 = arith.constant 0 : index
    %c0_10 = arith.constant 0 : index
    %c16 = arith.constant 16 : index
    %12 = vector.load %arg1[%c0_9, %c0_10, %c16] : memref<1x8x32xf32, #tpu.memory_space<vmem>>, vector<1x8x8xf32>
    %13 = vector.shape_cast %12 : vector<1x8x8xf32> to vector<8x8xf32>
    %14 = arith.truncf %13 : vector<8x8xf32> to vector<8x8xbf16>
    %c2 = arith.constant 2 : index
    %c0_11 = arith.constant 0 : index
    %c0_12 = arith.constant 0 : index
    %15 = vector.load %arg7[%c2, %c0_11, %c0_12] : memref<4x8x8xbf16, #tpu.memory_space<vmem>>, vector<1x8x8xbf16>
    %16 = vector.shape_cast %15 : vector<1x8x8xbf16> to vector<8x8xbf16>
    %17 = vector.shape_cast %14 : vector<8x8xbf16> to vector<1x8x8xbf16>
    tpu.vector_store %arg7[%c2, %c0_11, %c0_12], %17 {strides = array<i32>} : memref<4x8x8xbf16, #tpu.memory_space<vmem>>, vector<1x8x8xbf16>,
    %c0_13 = arith.constant 0 : index
    %c0_14 = arith.constant 0 : index
    %c24 = arith.constant 24 : index
    %18 = vector.load %arg1[%c0_13, %c0_14, %c24] : memref<1x8x32xf32, #tpu.memory_space<vmem>>, vector<1x8x8xf32>
    %19 = vector.shape_cast %18 : vector<1x8x8xf32> to vector<8x8xf32>
    %20 = arith.truncf %19 : vector<8x8xf32> to vector<8x8xbf16>
    %c3 = arith.constant 3 : index
    %c0_15 = arith.constant 0 : index
    %c0_16 = arith.constant 0 : index
    %21 = vector.load %arg7[%c3, %c0_15, %c0_16] : memref<4x8x8xbf16, #tpu.memory_space<vmem>>, vector<1x8x8xbf16>
    %22 = vector.shape_cast %21 : vector<1x8x8xbf16> to vector<8x8xbf16>
    %23 = vector.shape_cast %20 : vector<8x8xbf16> to vector<1x8x8xbf16>
    tpu.vector_store %arg7[%c3, %c0_15, %c0_16], %23 {strides = array<i32>} : memref<4x8x8xbf16, #tpu.memory_space<vmem>>, vector<1x8x8xbf16>,
    %c0_17 = arith.constant 0 : index
    %c0_18 = arith.constant 0 : index
    %24 = vector.load %arg2[%c0_17, %c0_18] : memref<8x24xbf16, #tpu.memory_space<vmem>>, vector<8x24xbf16>
    %c0_19 = arith.constant 0 : index
    %c0_20 = arith.constant 0 : index
    %25 = vector.load %arg3[%c0_19, %c0_20] : memref<1x24xf32, #tpu.memory_space<vmem>>, vector<1x24xf32>
    %26 = vector.shape_cast %25 : vector<1x24xf32> to vector<1x24xf32>
    %27 = vector.broadcast %26 : vector<1x24xf32> to vector<8x24xf32>
    %28 = tpu.iota {dimensions = array<i32: 0>} : vector<8x8xi32>
    %29 = tpu.iota {dimensions = array<i32: 1>} : vector<8x8xi32>
    %30 = arith.cmpi sle, %29, %28 : vector<8x8xi32>
    %cst = arith.constant 0.000000e+00 : f32
    %31 = vector.broadcast %cst : f32 to vector<8x32xf32>
    %c0_21 = arith.constant 0 : index
    %c0_22 = arith.constant 0 : index
    %32 = vector.load %arg8[%c0_21, %c0_22] : memref<8x32xf32, #tpu.memory_space<vmem>>, vector<8x32xf32>
    tpu.vector_store %arg8[%c0_21, %c0_22], %31 {strides = array<i32>} : memref<8x32xf32, #tpu.memory_space<vmem>>, vector<8x32xf32>,
    %cst_23 = arith.constant -1.000000e+20 : f32
    %c0_i32 = arith.constant 0 : i32
    %c4_i32 = arith.constant 4 : i32
    %33 = arith.addi %c0_i32, %c4_i32 : i32
    %c1_i32 = arith.constant 1 : i32
    scf.for %arg9 = %c0_i32 to %33 step %c1_i32  : i32 {
      %41 = arith.index_cast %arg9 : i32 to index
      %c0_32 = arith.constant 0 : index
      %c0_33 = arith.constant 0 : index
      %42 = vector.load %arg7[%41, %c0_32, %c0_33] : memref<4x8x8xbf16, #tpu.memory_space<vmem>>, vector<1x8x8xbf16>
      %43 = vector.shape_cast %42 : vector<1x8x8xbf16> to vector<8x8xbf16>
      %cst_34 = arith.constant dense<0.000000e+00> : vector<8x24xf32>
      %44 = tpu.matmul %43, %24, %cst_34 {dimension_numbers = #tpu.dot_dimension_numbers<[1], [0], [0], [1], [0, 0, 1, 1], [], []>} : vector<8x8xbf16>, vector<8x24xbf16>, vector<8x24xf32> -> vector<8x24xf32>
      %45 = arith.addf %44, %27 : vector<8x24xf32>
      %46 = vector.extract_strided_slice %45 {offsets = [0, 0], sizes = [8, 8], strides = [1, 1]} : vector<8x24xf32> to vector<8x8xf32>
      %47 = arith.truncf %46 : vector<8x8xf32> to vector<8x8xbf16>
      %48 = vector.extract_strided_slice %45 {offsets = [0, 8], sizes = [8, 8], strides = [1, 1]} : vector<8x24xf32> to vector<8x8xf32>
      %49 = arith.truncf %48 : vector<8x8xf32> to vector<8x8xbf16>
      %50 = vector.extract_strided_slice %45 {offsets = [0, 16], sizes = [8, 8], strides = [1, 1]} : vector<8x24xf32> to vector<8x8xf32>
      %51 = arith.truncf %50 : vector<8x8xf32> to vector<8x8xbf16>
      %cst_35 = arith.constant dense<0.000000e+00> : vector<8x8xf32>
      %52 = tpu.matmul %47, %49, %cst_35 {dimension_numbers = #tpu.dot_dimension_numbers<[1], [1], [0], [0], [0, 0, 1, 0], [], []>} : vector<8x8xbf16>, vector<8x8xbf16>, vector<8x8xf32> -> vector<8x8xf32>
      %53 = vector.broadcast %cst_23 : f32 to vector<8x8xf32>
      %54 = arith.select %30, %52, %53 : vector<8x8xi1>, vector<8x8xf32>
      %cst_36 = arith.constant dense<0xFF800000> : vector<8xf32>
      %55 = vector.multi_reduction <maximumf>, %54, %cst_36 [1] : vector<8x8xf32> to vector<8xf32>
      %56 = vector.shape_cast %55 : vector<8xf32> to vector<8x1xf32>
      %57 = vector.broadcast %56 : vector<8x1xf32> to vector<8x8xf32>
      %58 = arith.subf %54, %57 : vector<8x8xf32>
      %59 = math.exp %58 : vector<8x8xf32>
      %cst_37 = arith.constant dense<0.000000e+00> : vector<8xf32>
      %60 = vector.multi_reduction <add>, %59, %cst_37 [1] : vector<8x8xf32> to vector<8xf32>
      %61 = vector.shape_cast %60 : vector<8xf32> to vector<8x1xf32>
      %62 = arith.truncf %59 : vector<8x8xf32> to vector<8x8xbf16>
      %cst_38 = arith.constant dense<0.000000e+00> : vector<8x8xf32>
      %63 = tpu.matmul %62, %51, %cst_38 {dimension_numbers = #tpu.dot_dimension_numbers<[1], [0], [0], [1], [0, 0, 1, 1], [], []>} : vector<8x8xbf16>, vector<8x8xbf16>, vector<8x8xf32> -> vector<8x8xf32>
      %64 = tpu.reciprocal %61 {approx = true} : vector<8x1xf32> -> vector<8x1xf32>
      %65 = vector.broadcast %64 : vector<8x1xf32> to vector<8x8xf32>
      %66 = arith.mulf %63, %65 : vector<8x8xf32>
      %67 = arith.index_cast %arg9 : i32 to index
      %c0_39 = arith.constant 0 : index
      %c0_40 = arith.constant 0 : index
      %68 = vector.load %arg4[%67, %c0_39, %c0_40] : memref<4x8x32xbf16, #tpu.memory_space<vmem>>, vector<1x8x32xbf16>
      %69 = vector.shape_cast %68 : vector<1x8x32xbf16> to vector<8x32xbf16>
      %c0_41 = arith.constant 0 : index
      %c0_42 = arith.constant 0 : index
      %70 = vector.load %arg8[%c0_41, %c0_42] : memref<8x32xf32, #tpu.memory_space<vmem>>, vector<8x32xf32>
      %71 = arith.truncf %66 : vector<8x8xf32> to vector<8x8xbf16>
      %cst_43 = arith.constant dense<0.000000e+00> : vector<8x32xf32>
      %72 = tpu.matmul %71, %69, %cst_43 {dimension_numbers = #tpu.dot_dimension_numbers<[1], [0], [0], [1], [0, 0, 1, 1], [], []>} : vector<8x8xbf16>, vector<8x32xbf16>, vector<8x32xf32> -> vector<8x32xf32>
      %73 = arith.addf %70, %72 : vector<8x32xf32>
      %c0_44 = arith.constant 0 : index
      %c0_45 = arith.constant 0 : index
      %74 = vector.load %arg8[%c0_44, %c0_45] : memref<8x32xf32, #tpu.memory_space<vmem>>, vector<8x32xf32>
      tpu.vector_store %arg8[%c0_44, %c0_45], %73 {strides = array<i32>} : memref<8x32xf32, #tpu.memory_space<vmem>>, vector<8x32xf32>,
    }
    %c4_i32_24 = arith.constant 4 : i32
    %c0_25 = arith.constant 0 : index
    %c0_26 = arith.constant 0 : index
    %34 = vector.load %arg8[%c0_25, %c0_26] : memref<8x32xf32, #tpu.memory_space<vmem>>, vector<8x32xf32>
    %c0_27 = arith.constant 0 : index
    %c0_28 = arith.constant 0 : index
    %35 = vector.load %arg5[%c0_27, %c0_28] : memref<1x32xf32, #tpu.memory_space<vmem>>, vector<1x32xf32>
    %36 = vector.broadcast %35 : vector<1x32xf32> to vector<8x32xf32>
    %37 = arith.addf %34, %36 : vector<8x32xf32>
    %c0_29 = arith.constant 0 : index
    %c0_30 = arith.constant 0 : index
    %c0_31 = arith.constant 0 : index
    %38 = vector.load %arg6[%c0_29, %c0_30, %c0_31] : memref<1x8x32xf32, #tpu.memory_space<vmem>>, vector<1x8x32xf32>
    %39 = vector.shape_cast %38 : vector<1x8x32xf32> to vector<8x32xf32>
    %40 = vector.shape_cast %37 : vector<8x32xf32> to vector<1x8x32xf32>
    tpu.vector_store %arg6[%c0_29, %c0_30, %c0_31], %40 {strides = array<i32>} : memref<1x8x32xf32, #tpu.memory_space<vmem>>, vector<1x8x32xf32>,
    return
  }
  func.func @transform_0(%arg0: i32) -> (i32, i32, i32) {
    %c0_i32 = arith.constant 0 : i32
    %c0_i32_0 = arith.constant 0 : i32
    %c0_i32_1 = arith.constant 0 : i32
    return %arg0, %c0_i32, %c0_i32_0 : i32, i32, i32
  }
  func.func @transform_1(%arg0: i32) -> (i32, i32) {
    %c0_i32 = arith.constant 0 : i32
    %c0_i32_0 = arith.constant 0 : i32
    %c0_i32_1 = arith.constant 0 : i32
    return %c0_i32, %c0_i32_0 : i32, i32
  }
  func.func @transform_2(%arg0: i32) -> (i32, i32) {
    %c0_i32 = arith.constant 0 : i32
    %c0_i32_0 = arith.constant 0 : i32
    %c0_i32_1 = arith.constant 0 : i32
    return %c0_i32, %c0_i32_0 : i32, i32
  }
  func.func @transform_3(%arg0: i32) -> (i32, i32, i32) {
    %c0_i32 = arith.constant 0 : i32
    %c0_i32_0 = arith.constant 0 : i32
    %c0_i32_1 = arith.constant 0 : i32
    %c0_i32_2 = arith.constant 0 : i32
    return %c0_i32, %c0_i32_0, %c0_i32_1 : i32, i32, i32
  }
  func.func @transform_4(%arg0: i32) -> (i32, i32) {
    %c0_i32 = arith.constant 0 : i32
    %c0_i32_0 = arith.constant 0 : i32
    %c0_i32_1 = arith.constant 0 : i32
    return %c0_i32, %c0_i32_0 : i32, i32
  }
  func.func @transform_5(%arg0: i32) -> (i32, i32, i32) {
    %c0_i32 = arith.constant 0 : i32
    %c0_i32_0 = arith.constant 0 : i32
    %c0_i32_1 = arith.constant 0 : i32
    return %arg0, %c0_i32, %c0_i32_0 : i32, i32, i32
  }
}

</mosaic_0001>

<bundles_post_ra>
// kernel: tpu_custom_call.1
= control target key start
LH: loop header
LB: loop body
LE: loop exit
PB: predicated region body
PF: predicated region fallthrough
CT: control target
= control target key end

     0   :  { %10 = vsyncpa [#allocation5], 0  ;;  %s1478_s0 = inlined_call_operand.hbm [shape: f32[2,8,32], index: 0, kind: input, shape index: {}]   ;;  %s1479_s1 = inlined_call_operand.hbm [shape: bf16[8,24], index: 1, kind: input, shape index: {}]   ;;  %s1480_s2 = inlined_call_operand.hbm [shape: f32[1,24], index: 2, kind: input, shape index: {}]   ;;  %s1481_s3 = inlined_call_operand.hbm [shape: bf16[4,8,32], index: 3, kind: input, shape index: {}]   ;;  %s1482_s4 = inlined_call_operand.hbm [shape: f32[1,32], index: 4, kind: input, shape index: {}]   ;;  %s1483_s5 = inlined_call_operand.hbm [shape: f32[2,8,32], index: 5, kind: output, shape index: {}]  }
   0x1   :  { %12 = vsyncpa [#allocation5 + $0x1], 0 }
   0x2   :  { %13 = vsyncpa [#allocation8], 0 }
   0x3   :  { %14 = vsyncpa [#allocation11], 0 }
   0x4   :  { %15 = vsyncpa [#allocation6], 0 }
   0x5   :  { %17 = vsyncpa [#allocation6 + $0x1], 0  ;;  %s1151_s18 = smov 0   ;;  %s1153_s19 = smov 0  }
   0x6   :  { %s1155_s20 = smov 0   ;;  %s1157_s21 = smov 0  }
   0x7 LB: > { %s1105_s22 = smov [#allocation7]   ;;  %s1172_s24 = sadd.s32 4294967295, %s1099_s21   ;;  %s1099_s21 = sphi %s1157_s21, %s1507_s21   ;;  %s1095_s20 = sphi %s1155_s20, %s1506_s20   ;;  %s1091_s19 = sphi %s1153_s19, %s1505_s19   ;;  %s1087_s18 = sphi %s1151_s18, %s1504_s18  }
   0x8   : > { %s177_s23 = sshll.u32 %s1105_s22, 4  ;;  %p705_p0 = scmp.ge.s32.totalorder %s1099_s21, 1  ;;  %s178_s23 = int_to_ptr.vmem [resolvable:$true] %s177_s23 }
   0x9   : > { %p1484_p1 = scmp.eq.s32.totalorder %s1172_s24, 0  ;;  %p164_p2 = scmp.lt.s32.totalorder %s1099_s21, 3 }
   0xa   : > { %s1106_s26 = smov [#allocation10]   ;;  %s1107_s29 = smov [#allocation9]  }
   0xb   : > { %p1177_p3 = pnand %p705_p0, %p164_p2  ;;  %s198_s27 = sshll.u32 %s1106_s26, 4  ;;  %s1184_s27 = int_to_ptr.vmem [resolvable:$true] %s198_s27 }
   0xc   : > { %s188_s30 = sshll.u32 %s1107_s29, 4  ;;  %s879_s8 = scalar_lea.hbm %s1479_s1, 64  ;;  %s1192_s30 = int_to_ptr.vmem [resolvable:$true] %s188_s30 }
   0xd   : > { %s1487_s25 = scalar_select %p1177_p3, 1, 0 }
   0xe   : > { %p790_p5 = pneg %p1177_p3  ;;  %p880_p7 = scmp.ne.s32.totalorder %s1479_s1, %s879_s8 }
   0xf   : > { %p886_p11 = scmp.lt.u32.totalorder %s879_s8, %s1479_s1 }
  0x10   : > { %p1188_p6 = pnand %p790_p5, %p1484_p1 }
  0x12   : > { %p1202_p8 = pneg %p1188_p6 }
  0x14   : > { %p882_p9 = pnand %p1202_p8, %p880_p7 }
  0x16   : > { %p883_p10 = pneg %p882_p9 }
  0x18   : > { %p888_p12 = pnand %p886_p11, %p883_p10 }
  0x1a   : > { %891 = shalt.err (!%p888_p12)
}
  0x1b   : > { %s892_s14 = scalar_lea.vmem %s178_s23, 64  ;;  %p900_p5 = scmp.lt.s32.totalorder %s178_s23, %s178_s23 }
  0x1c   : > { %p893_p13 = scmp.ne.s32.totalorder %s178_s23, %s892_s14  ;;  %p901_p4 = scmp.lt.s32.totalorder %s892_s14, %s892_s14 }
  0x1e   : > { %p895_p0 = pnand %p893_p13, %p1202_p8  ;;  %p902_p1 = por %p901_p4, %p900_p5 }
  0x20   : > { %p896_p2 = pneg %p895_p0 }
  0x22   : > { %p903_p3 = pnand %p902_p1, %p896_p2 }
  0x24   : > { %906 = shalt.err (!%p903_p3)
}
  0x25   : > { %793 = dma.hbm_to_vmem [thread:$0]  (!%p1188_p6), %s1479_s1, 64, %s178_s23, [#allocation8]  }
  0x26   : > { %s907_s26 = scalar_lea.hbm %s1481_s3, 256 }
  0x27   : > { %p908_p7 = scmp.ne.s32.totalorder %s1481_s3, %s907_s26  ;;  %p914_p1 = scmp.lt.u32.totalorder %s907_s26, %s1481_s3 }
  0x29   : > { %p910_p9 = pnand %p908_p7, %p1202_p8 }
  0x2b   : > { %p911_p4 = pneg %p910_p9 }
  0x2d   : > { %p916_p3 = pnand %p914_p1, %p911_p4 }
  0x2f   : > { %919 = shalt.err (!%p916_p3)
}
  0x30   : > { %s920_s23 = scalar_lea.vmem %s1184_s27, 256  ;;  %p928_p13 = scmp.lt.s32.totalorder %s1184_s27, %s1184_s27 }
  0x31   : > { %p921_p10 = scmp.ne.s32.totalorder %s1184_s27, %s920_s23  ;;  %p929_p0 = scmp.lt.s32.totalorder %s920_s23, %s920_s23 }
  0x33   : > { %p923_p11 = pnand %p921_p10, %p1202_p8  ;;  %p930_p2 = por %p929_p0, %p928_p13 }
  0x35   : > { %p924_p12 = pneg %p923_p11 }
  0x37   : > { %p931_p5 = pnand %p930_p2, %p924_p12 }
  0x39   : > { %934 = shalt.err (!%p931_p5)
}
  0x3a   : > { %s1108_s9 = smov 64   ;;  %s1109_s10 = smov 4  }
  0x3b   : > { %799 = dma.hbm_to_vmem [thread:$0]  (!%p1188_p6), %s1481_s3, 256, %s1184_s27, [#allocation11], %s1108_s9, %s1108_s9, %s1109_s10  }
  0x3c   : > { %s935_s16 = scalar_lea.hbm %s1480_s2, 16 }
  0x3d   : > { %p936_p7 = scmp.ne.s32.totalorder %s1480_s2, %s935_s16  ;;  %p942_p1 = scmp.lt.u32.totalorder %s935_s16, %s1480_s2 }
  0x3f   : > { %p938_p9 = pnand %p936_p7, %p1202_p8 }
  0x41   : > { %p939_p4 = pneg %p938_p9 }
  0x43   : > { %p944_p3 = pnand %p942_p1, %p939_p4 }
  0x45   : > { %947 = shalt.err (!%p944_p3)
}
  0x46   : > { %s948_s27 = scalar_lea.vmem %s1192_s30, 16  ;;  %s955_s6 = scalar_lea.vmem %s1192_s30, 32 }
  0x47   : > { %p949_p10 = scmp.ne.s32.totalorder %s1192_s30, %s948_s27  ;;  %p956_p13 = scmp.lt.s32.totalorder %s1192_s30, %s1192_s30 }
  0x48   : > { %p957_p0 = scmp.lt.s32.totalorder %s955_s6, %s948_s27 }
  0x49   : > { %p951_p11 = pnand %p949_p10, %p1202_p8 }
  0x4a   : > { %p958_p2 = por %p957_p0, %p956_p13 }
  0x4b   : > { %p952_p12 = pneg %p951_p11 }
  0x4d   : > { %p959_p5 = pnand %p958_p2, %p952_p12 }
  0x4f   : > { %962 = shalt.err (!%p959_p5)
}
  0x50   : > { %796 = dma.hbm_to_vmem [thread:$0]  (!%p1188_p6), %s1480_s2, 16, %s1192_s30, [#allocation8]  }
  0x51   : > { %s1110_s23 = smov [#allocation12]   ;;  %s963_s13 = scalar_lea.hbm %s1482_s4, 16 }
  0x52   : > { %s212_s9 = sshll.u32 %s1110_s23, 4  ;;  %p964_p7 = scmp.ne.s32.totalorder %s1482_s4, %s963_s13  ;;  %s213_s9 = int_to_ptr.vmem [resolvable:$true] %s212_s9 }
  0x53   : > { %p970_p1 = scmp.lt.u32.totalorder %s963_s13, %s1482_s4 }
  0x54   : > { %p966_p9 = pnand %p964_p7, %p1202_p8 }
  0x56   : > { %p967_p4 = pneg %p966_p9 }
  0x58   : > { %p972_p3 = pnand %p970_p1, %p967_p4 }
  0x5a   : > { %975 = shalt.err (!%p972_p3)
}
  0x5b   : > { %s976_s30 = scalar_lea.vmem %s213_s9, 16  ;;  %s983_s22 = scalar_lea.vmem %s213_s9, 32 }
  0x5c   : > { %p977_p10 = scmp.ne.s32.totalorder %s213_s9, %s976_s30  ;;  %p984_p13 = scmp.lt.s32.totalorder %s213_s9, %s213_s9 }
  0x5d   : > { %p985_p0 = scmp.lt.s32.totalorder %s983_s22, %s976_s30 }
  0x5e   : > { %p979_p11 = pnand %p977_p10, %p1202_p8 }
  0x5f   : > { %p986_p2 = por %p985_p0, %p984_p13 }
  0x60   : > { %p980_p12 = pneg %p979_p11 }
  0x62   : > { %p987_p5 = pnand %p986_p2, %p980_p12 }
  0x64   : > { %990 = shalt.err (!%p987_p5)
}
  0x65   : > { %802 = dma.hbm_to_vmem [thread:$0]  (!%p1188_p6), %s1482_s4, 16, %s213_s9, [#allocation11]  }
  0x66   : > { %s704_s11 = sadd.s32 4294967294, %s1099_s21   ;;  %s1285_s28 = sadd.s32 1, %s1099_s21  }
  0x67   : > { %s27_s27 = ssub.s32 %s1099_s21, %s1285_s28  ;;  %s30_s6 = sadd.s32 1, %s1095_s20 }
  0x68   : > { %p28_p8 = scmp.eq.s32.totalorder %s27_s27, 0  ;;  %p37_p7 = scmp.ne.s32.totalorder %s1095_s20, %s1091_s19 }
  0x69   : > { %p38_p9 = scmp.eq.s32.totalorder %s1099_s21, 0  ;;  %p43_p4 = scmp.ne.s32.totalorder %s1091_s19, %s1087_s18 }
  0x6a   : > { %s1296_s7 = scalar_select %p28_p8, %s1095_s20, %s30_s6  }
  0x6b   : > { %p1298_p1 = por %p38_p9, %p37_p7  ;;  %p1491_p3 = scmp.eq.s32.totalorder %s1172_s24, 0 }
  0x6c   : > { %p151_p10 = scmp.eq.s32.totalorder %s1172_s24, 1  ;;  %p157_p11 = scmp.eq.s32.totalorder %s704_s11, 1 }
  0x6d   : > { %p1304_p6 = por %p1491_p3, %p43_p4  ;;  %p815_p12 = scmp.lt.s32.totalorder %s1099_s21, 2 }
  0x6e   : > { %s223_s9 = sand.u32 1, %s1095_s20   ;;  %p1311_p13 = por %p151_p10, %p37_p7 }
  0x6f   : > { %p1315_p0 = por %p157_p11, %p43_p4  ;;  %s711_s13 = sshll.u32 %s223_s9, 3 }
  0x70   : > { %s1493_s10 = scalar_select %p1311_p13, 1, 0 }
  0x71   : > { %s1494_s12 = scalar_select %p1315_p0, 1, 0 }
  0x72   : > { %s712_s14 = sshll.u32 %s1099_s21, 7  ;;  %s227_s30 = scalar_lea.vmem [#allocation4], %s711_s13 }
  0x73   : > { %s1323_s17 = scalar_lea.hbm %s1478_s0, %s712_s14  ;;  %s234_s22 = sshll.u32 %s227_s30, 4  ;;  %s1325_s22 = int_to_ptr.vmem [resolvable:$true] %s234_s22 }
  0x74   : > { %p1329_p2 = pnand %p815_p12, %p1298_p1  ;;  %s224_s29 = scalar_lea.sflag [#allocation5], %s223_s9 }
  0x75   : > { %s991_s11 = scalar_lea.hbm %s1323_s17, 128  ;;  %s996_s13 = scalar_lea.hbm %s1478_s0, 256 }
  0x76   : > { %p992_p5 = scmp.ne.s32.totalorder %s1323_s17, %s991_s11  ;;  %p993_p8 = pneg %p1329_p2 }
  0x77   : > { %p997_p4 = scmp.lt.u32.totalorder %s1323_s17, %s1478_s0  ;;  %p998_p1 = scmp.lt.u32.totalorder %s996_s13, %s991_s11 }
  0x78   : > { %p994_p7 = pnand %p993_p8, %p992_p5  ;;  %p1000_p10 = scmp.lt.u32.totalorder %s991_s11, %s1323_s17 }
  0x79   : > { %p999_p3 = por %p998_p1, %p997_p4 }
  0x7a   : > { %p995_p9 = pneg %p994_p7 }
  0x7b   : > { %p1001_p11 = por %p1000_p10, %p999_p3 }
  0x7d   : > { %p1002_p12 = pnand %p1001_p11, %p995_p9 }
  0x7f   : > { %1005 = shalt.err (!%p1002_p12)
}
  0x80   : > { %s1006_s9 = scalar_lea.vmem %s1325_s22, 128  ;;  %s1111_s15 = smov [#allocation4]  }
  0x81   : > { %p1007_p5 = scmp.ne.s32.totalorder %s1325_s22, %s1006_s9  ;;  %s1011_s16 = sshll.u32 %s1111_s15, 4  ;;  %s1012_s16 = int_to_ptr.vmem [resolvable:$false] %s1011_s16 }
  0x82   : > { %s1013_s30 = scalar_lea.vmem %s1012_s16, 256  ;;  %p1014_p13 = scmp.lt.s32.totalorder %s1325_s22, %s1012_s16 }
  0x83   : > { %p1009_p7 = pnand %p1007_p5, %p993_p8  ;;  %p1015_p4 = scmp.lt.s32.totalorder %s1013_s30, %s1006_s9 }
  0x85   : > { %p1010_p0 = pneg %p1009_p7  ;;  %p1016_p1 = por %p1015_p4, %p1014_p13 }
  0x87   : > { %p1017_p3 = pnand %p1016_p1, %p1010_p0 }
  0x89   : > { %1020 = shalt.err (!%p1017_p3)
}
  0x8a   : > { %806 = dma.hbm_to_vmem [thread:$0]  (!%p1329_p2), %s1323_s17, 128, %s1325_s22, %s224_s29  }
  0x8b   : > { %p1496_p9 = scmp.ne.s32.totalorder %s1487_s25, 0 }
  0x8c   : > { %s1361_s11 = sand.u32 (!%p1496_p9), 1, %s1091_s19  }
  0x8d   : > { %243 = sbr.rel (%p1496_p9) target bundleno = 1453 (0x5ad), region = 40  ;;  %s714_s27 = sshll.u32 (!%p1496_p9), %s1361_s11, 3 }
  0x8e   : > { %s246_s6 = scalar_lea.sflag (!%p1496_p9), [#allocation5], %s1361_s11  ;;  %s249_s13 = scalar_lea.vmem (!%p1496_p9), [#allocation4], %s714_s27 }
  0x94   : > { %1070 = dma.done.wait (%p1304_p6), %s246_s6, 128  }
  0x95   : > { %1072 = vsyncadd (%p1304_p6), %s246_s6, 4294967168  ;;  %p1497_p13 = scmp.eq.s32.totalorder %s1172_s24, 0 }
  0x97   : > { %1074 = dma.done.wait (%p1497_p13), [#allocation8], 80   ;;  %p1498_p0 = pmov %p1497_p13 }
  0x99   : > { %1076 = vsyncadd (%p1498_p0), [#allocation8], 4294967216  ;;  %p1499_p2 = pmov %p1498_p0 }
  0x9a   : > { %p1500_p8 = pmov %p1498_p0 }
  0x9b   : > { %1078 = dma.done.wait (%p1499_p2), [#allocation11], 272  }
  0x9c   : > { %1080 = vsyncadd (%p1500_p8), [#allocation11], 4294967024  ;;  %vm340_vm0 = vcmask 261120   ;;  %v335_v0 = vlaneseq  ;;  %v1112_v1 = vmov 0.0   ;;  %v1386_v4 = vld [vmem:[#allocation7] sm:$0xf] }
  0x9d   : > { %341 = vst.msk [vmem:[#allocation3] sm:$0xff] %vm340_vm0, %v1112_v1  ;;  %v1388_v5 = vld [vmem:[#allocation9] ss:$0 sm:$0xff]  ;;  %v297_v6 = vld [vmem:[%s249_s13] sm:$0xff]  ;;  %vm295_vm2 = vcmask 60416   ;;  %s1113_s25 = smov 120  }
  0x9e   : > { %v1380_v2 = vshrl.u32 %v335_v0, 7  ;;  %v1382_v3 = vand.u32 127, %v335_v0  ;;  %v735_v7 = vpack.c.bf16 %v297_v6, %v297_v6  ;;  %s1114_s23 = smov 104   ;;  %s1115_s17 = smov 112  }
  0x9f   : > { %s1392_s22 = scalar_lea.vmem [#allocation13], %s714_s27  ;;  %s1394_s26 = smov 0  }
  0xa0   : > { %vm339_vm1 = vcmp.le.s32.totalorder %v1382_v3, %v1380_v2  ;;  %302 = vrot.lane.b32.xlu0 %v735_v7, %s1113_s25  ;;  %322 = vrot.lane.b32.xlu1 %v735_v7, %s1114_s23  ;;  %296 = vst.msk [vmem:[#allocation2] sm:$0xf] %vm295_vm2, %v735_v7 }
  0xa4   : > { %312 = vrot.lane.b32.xlu0 %v735_v7, %s1115_s17 }
 0x112   : > { %v303_v8 = vpop.permute.xlu0 %302  ;;  %v323_v9 = vpop.permute.xlu1 %322 }
 0x113   : > { %306 = vst.msk [vmem:[#allocation2 + $0x4] sm:$0xf] %vm295_vm2, %v303_v8  ;;  %326 = vst.msk [vmem:[#allocation2 + $0xc] sm:$0xf] %vm295_vm2, %v323_v9 }
 0x116   : > { %v313_v10 = vpop.permute.xlu0 %312 }
 0x117   : > { %316 = vst.msk [vmem:[#allocation2 + $0x8] sm:$0xf] %vm295_vm2, %v313_v10 }
 0x118 LB: >> { %vm355_vm3 = vcmask 1043456   ;;  %v1116_v11 = vmov 0.0   ;;  %vm1117_vm4 = vmmov 0   ;;  %s724_s29 = sshll.u32 %s1103_s26, 2  ;;  %vm351_vm5 = vcmask 64512   ;;  %s1118_s14 = smov 112   ;;  %s1103_s26 = sphi %s1394_s26, %s347_s26  }
 0x119   : >> { %746 = vmatprep.subr.bf16.mxu0 %v1116_v11  ;;  %v357_v12 = vsel %vm355_vm3, %v1386_v4, 0  ;;  %748 = vmatprep.mubr.msk.bf16.mxu0 %vm1117_vm4, %v1116_v11  ;;  %s349_s8 = scalar_lea.vmem [#allocation2], %s724_s29  ;;  %s1119_s9 = smov 120   ;;  %v513_v46 = vld [vmem:[#allocation3] sm:$0xff] }
 0x11a   : >> { %747 = vmatpush3.bf16.msra.mxu0 %v357_v12  ;;  %752 = vmatprep.subr.bf16.mxu1 %v1116_v11  ;;  %s511_s15 = scalar_lea.vmem [#allocation10], %s724_s29  ;;  %s347_s26 = sadd.s32 1, %s1103_s26  }
 0x11b   : >> { %758 = vmatprep.subr.bf16.mxu0 %v1116_v11  ;;  %754 = vmatprep.mubr.msk.bf16.mxu1 %vm1117_vm4, %v1116_v11  ;;  %v512_v36 = vld [vmem:[%s511_s15] sm:$0xf]  ;;  %p344_p6 = scmp.ge.s32.totalorder %s347_s26, 4  }
 0x11c   : >> { %v519_v37 = vsel %vm355_vm3, %v512_v36, 0  ;;  %v730_v53 = vld [vmem:[#allocation12] ss:$0 sm:$0xff] (%p344_p6)  ;;  %s732_s16 = sshll.u32 (%p344_p6), %s1172_s24, 7  ;;  %s587_s13 = sshll.u32 (%p344_p6), %s1392_s22, 4  ;;  %s1434_s13 = int_to_ptr.vmem [resolvable:$true] %s587_s13 }
 0x11d   : > { %s1431_s6 = scalar_lea.hbm (%p344_p6), %s1483_s5, %s732_s16  ;;  %s574_s25 = scalar_lea.sflag (%p344_p6), [#allocation6], %s1361_s11 }
 0x11e   : >> { %v350_v13 = vld [vmem:[%s349_s8] sm:$0xf]  ;;  %s1021_s23 = scalar_lea.vmem (%p344_p6), %s1434_s13, 128  ;;  %p1501_p11 = scmp.ne.s32.totalorder (%p344_p6), %s1493_s10, 0 }
 0x11f   : >> { %749 = vmatmul.mubr.msk.bf16.vlgmr.msra.gmra.mrb[0].mxu0 %vm351_vm5, %v350_v13  ;;  %p1022_p10 = scmp.ne.s32.totalorder (%p344_p6), %s1434_s13, %s1021_s23  ;;  %s1120_s24 = smov (%p344_p6), [#allocation13]  }
 0x120   : >> { %760 = vmatprep.mubr.msk.bf16.mxu0 %vm1117_vm4, %v1116_v11  ;;  %s1025_s17 = sshll.u32 (%p344_p6), %s1120_s24, 4  ;;  %s1026_s17 = int_to_ptr.vmem [resolvable:$false] %s1025_s17 }
 0x121   : > { %p1023_p12 = pnand (%p344_p6), %p1022_p10, %p1501_p11  ;;  %s1027_s26 = scalar_lea.vmem (%p344_p6), %s1026_s17, 256 }
 0x122   : > { %p1028_p7 = scmp.lt.s32.totalorder (%p344_p6), %s1434_s13, %s1026_s17  ;;  %p1029_p4 = scmp.lt.s32.totalorder (%p344_p6), %s1027_s26, %s1021_s23 }
 0x123   : > { %p1024_p5 = pneg (%p344_p6), %p1023_p12 }
 0x124   : > { %p1030_p1 = por (%p344_p6), %p1029_p4, %p1028_p7 }
 0x126   : > { %p1031_p3 = pnand (%p344_p6), %p1030_p1, %p1024_p5 }
 0x1f2   : >> { %v393_v14 = vpop.f32.mrb[0].mxu0 }
 0x1f3   : >> { %v394_v15 = vadd.f32 %v1388_v5, %v393_v14  ;;  %v750_v16 = vpop.f32.mrb[1].mxu0 }
 0x1f4   : >> { %v396_v17 = vpop.f32.mrb[2].mxu0 }
 0x1f5   : >> { %v399_v18 = vpack.c.bf16 %v394_v15, %v394_v15  ;;  %v751_v19 = vpop.f32.mrb[3].mxu0 }
 0x1f7   : >> { %460 = vrot.lane.b32.xlu1 %v399_v18, %s1118_s14  ;;  %401 = vrot.lane.b32.xlu0 %v399_v18, %s1119_s9 }
 0x269   : >> { %v461_v20 = vpop.permute.xlu1 %460  ;;  %v402_v21 = vpop.permute.xlu0 %401 }
 0x26a   : >> { %v466_v22 = vsel %vm355_vm3, %v461_v20, 0  ;;  %v407_v23 = vsel %vm351_vm5, %v402_v21, 0 }
 0x26b   : >> { %753 = vmatpush3.bf16.xpose.msra.mxu1 %v407_v23  ;;  %759 = vmatpush3.bf16.msra.mxu0 %v466_v22 }
 0x26c   : >> { %764 = vmatprep.subr.bf16.mxu1 %v1116_v11 }
 0x272   : >> { %755 = vmatmul.mubr.msk.bf16.vlgmr.msra.gmra.mrb[0].mxu1 %vm351_vm5, %v399_v18 }
 0x273   : >> { %766 = vmatprep.mubr.msk.bf16.mxu1 %vm1117_vm4, %v1116_v11  ;;  %765 = vmatpush3.bf16.msra.mxu1 %v519_v37 }
 0x345   : >> { %v443_v24 = vpop.f32.mrb[0].mxu1 }
 0x346   : >> { %v449_v25 = vsel %vm339_vm1, %v443_v24, -1e+20  ;;  %v756_v26 = vpop.f32.mrb[1].mxu1 }
 0x347   : >> { %v446_v27 = vpop.f32.mrb[2].mxu1  ;;  %v450_v28 = vsel %vm351_vm5, %v449_v25, -inf }
 0x348   : >> { %451 = vmax.xlane.f32.xlu0 %v450_v28  ;;  %v757_v29 = vpop.f32.mrb[3].mxu1 }
 0x3d5   : >> { %v452_v30 = vpop.xlane.xlu0 %451 }
 0x3d6   : >> { %v453_v31 = vsub.f32 %v449_v25, %v452_v30 }
 0x3d8   : >> { %v454_v32 = vmul.f32 1.442695, %v453_v31 }
 0x3da   : >> { %875 = vpow2.f32 %v454_v32 }
 0x3e4   : >> { %v876_v33 = vpop.eup %875 }
 0x3e5   : >> { %v456_v34 = vsel %vm351_vm5, %v876_v33, 0.0  ;;  %v459_v35 = vpack.c.bf16 %v876_v33, %v876_v33 }
 0x3e6   : >> { %457 = vadd.xlane.f32.xlu1 %v456_v34 }
 0x3e7   : >> { %761 = vmatmul.mubr.msk.bf16.vlgmr.msra.gmra.mrb[4].mxu0 %vm351_vm5, %v459_v35 }
 0x473   : >> { %v458_v38 = vpop.xlane.xlu1 %457 }
 0x474   : >> { %877 = vrcp.f32 %v458_v38 }
 0x47e   : >> { %v878_v39 = vpop.eup %877 }
 0x4ba   : >> { %v502_v40 = vpop.f32.mrb[4].mxu0 }
 0x4bb   : >> { %v509_v41 = vmul.f32 %v878_v39, %v502_v40  ;;  %v762_v42 = vpop.f32.mrb[5].mxu0 }
 0x4bc   : >> { %v505_v43 = vpop.f32.mrb[6].mxu0 }
 0x4bd   : >> { %v514_v44 = vpack.c.bf16 %v509_v41, %v509_v41  ;;  %v763_v45 = vpop.f32.mrb[7].mxu0 }
 0x4bf   : >> { %767 = vmatmul.mubr.msk.bf16.vlgmr.msra.gmra.mrb[4].mxu1 %vm351_vm5, %v514_v44 }
 0x58f   : > { %346 = sbr.rel (!%p344_p6) target bundleno = 280 (0x118), region = 113 }
 0x592   : >> { %v555_v47 = vpop.f32.mrb[4].mxu1 }
 0x593   : >> { %v561_v48 = vadd.f32 %v555_v47, %v513_v46  ;;  %v768_v49 = vpop.f32.mrb[5].mxu1 }
 0x594   : >> { %v558_v50 = vpop.f32.mrb[6].mxu1 }
 0x595   : >> { %562 = vst.msk [vmem:[#allocation3] sm:$0xff] %vm340_vm0, %v561_v48  ;;  %v769_v51 = vpop.f32.mrb[7].mxu1 }
 0x59c   : > { %v563_v52 = vld [vmem:[#allocation3] sm:$0xff] }
 0x59d   : > { %v571_v54 = vadd.f32 %v730_v53, %v563_v52 }
 0x59f   : > { %572 = vst.msk [vmem:[%s1392_s22] sm:$0xff] %vm340_vm0, %v571_v54 }
 0x5a0   : > { %1034 = shalt.err (!%p1031_p3)
}
 0x5a1   : > { %s1035_s11 = scalar_lea.hbm %s1431_s6, 128  ;;  %s1039_s8 = scalar_lea.hbm %s1483_s5, 256 }
 0x5a2   : > { %p1036_p9 = scmp.ne.s32.totalorder %s1431_s6, %s1035_s11  ;;  %p1040_p2 = scmp.lt.u32.totalorder %s1431_s6, %s1483_s5 }
 0x5a3   : > { %p1041_p8 = scmp.lt.u32.totalorder %s1039_s8, %s1035_s11  ;;  %p1043_p10 = scmp.lt.u32.totalorder %s1035_s11, %s1431_s6 }
 0x5a4   : > { %p1037_p13 = pnand %p1036_p9, %p1501_p11 }
 0x5a5   : > { %p1042_p6 = por %p1041_p8, %p1040_p2 }
 0x5a6   : > { %p1038_p0 = pneg %p1037_p13 }
 0x5a7   : > { %p1044_p12 = por %p1043_p10, %p1042_p6 }
 0x5a9   : > { %p1045_p5 = pnand %p1044_p12, %p1038_p0 }
 0x5ab   : > { %1048 = shalt.err (!%p1045_p5)
}
 0x5ac   : > { %788 = dma.vmem_to_hbm [thread:$0]  (%p1501_p11), %s1434_s13, 128, %s1431_s6, %s574_s25  }
 0x5ad PF: > { %s599_s15 = sand.u32 1, %s1087_s18   ;;  %p1502_p7 = scmp.ne.s32.totalorder %s1494_s12, 0 }
 0x5ae   : > { %p1503_p4 = scmp.ge.s32.totalorder %s1099_s21, 2  ;;  %s600_s16 = scalar_lea.sflag [#allocation6], %s599_s15 }
 0x5b0   : > { %p808_p1 = pnand %p1503_p4, %p1502_p7 }
 0x5b2   : > { %1082 = dma.done.wait (!%p808_p1), %s600_s16, 128  }
 0x5b3   : > { %1084 = vsyncadd (!%p808_p1), %s600_s16, 4294967168  ;;  %p20_p3 = scmp.ge.s32.totalorder %s1285_s28, 4   ;;  %s1504_s18 = smov %s1091_s19 }
 0x5b4   : > { %s1505_s19 = smov %s1095_s20  ;;  %s1506_s20 = smov %s1296_s7 }
 0x5b5   : > { %s1507_s21 = smov %s1285_s28  ;;  %22 = sbr.rel (!%p20_p3) target bundleno = 7 (0x7), region = 124 }
 0x5bc   :  { %605 = vsyncpa [#allocation5], 1 }
 0x5bd   :  { %607 = vsyncpa [#allocation5 + $0x1], 1 }
 0x5be   :  { %608 = vsyncpa [#allocation8], 1 }
 0x5bf   :  { %609 = vsyncpa [#allocation11], 1 }
 0x5c0   :  { %610 = vsyncpa [#allocation6], 1 }
 0x5c1   :  { %612 = vsyncpa [#allocation6 + $0x1], 1 }

</bundles_post_ra>
